<compile_context>
chip_gen: v7x
topology: tpu7x:2x2x1
jax: 0.10.0
libtpu: 0.0.40
codegen_flags: <defaults>
</compile_context>

<pallas_src>
import math

import jax
import jax.numpy as jnp
from jax.experimental import pallas as pl
from jax.experimental.pallas import tpu as pltpu


def _round_up(v, m):
    return ((v + m - 1) // m) * m


def _make_kernel(n_class, n_class_pad, s, cos_m, sin_m, th, mm, b_tile, c_tile):
    """Fused AAM-softmax forward: two class sweeps per batch tile.

    pass p==0 : online max / logsumexp + target-logit accumulation (no output).
    pass p==1 : recompute cos and emit final log-probs (logits - lse).
    """
    has_class_pad = (n_class_pad != n_class)
    NEG = -1e30  # Python float literal (never a captured jnp constant)

    def kernel(x_ref, wt_ref, lbl_ref,
               out_ref, loss_ref,
               m_sc, l_sc, t_sc, lse_sc):
        p = pl.program_id(1)
        j = pl.program_id(2)
        nc = pl.num_programs(2)

        @pl.when(jnp.logical_and(p == 0, j == 0))
        def _init():
            m_sc[...] = jnp.full(m_sc.shape, -jnp.inf, dtype=jnp.float32)
            l_sc[...] = jnp.zeros(l_sc.shape, dtype=jnp.float32)
            t_sc[...] = jnp.zeros(t_sc.shape, dtype=jnp.float32)

        # cosine(x_n, w_n) for this class tile -- MXU, bf16 in / f32 accumulate.
        cos = jnp.dot(x_ref[...], wt_ref[...],
                      preferred_element_type=jnp.float32)        # (b_tile, c_tile)

        labels = lbl_ref[...]                                    # (b_tile, 1) int32
        col = (jax.lax.broadcasted_iota(jnp.int32, (b_tile, c_tile), 1)
               + j * c_tile)
        is_tgt = col == labels                                   # bool, no f32 one_hot

        @pl.when(p == 0)
        def _pass0():
            # Angular-margin correction only for the target class (O(b_tile)).
            cos_t = jnp.sum(jnp.where(is_tgt, cos, 0.0), axis=1, keepdims=True)
            sin_t = jnp.sqrt(jnp.clip(1.0 - cos_t * cos_t, 0.0, 1.0))
            phi_t = cos_t * cos_m - sin_t * sin_m
            phi_t = jnp.where(cos_t - th > 0, phi_t, cos_t - mm)
            tgt_logit = s * phi_t                                # (b_tile, 1)

            logits = jnp.where(is_tgt, tgt_logit, s * cos)
            if has_class_pad:
                logits = jnp.where(col < n_class, logits, NEG)

            # Online max / logsumexp over the class axis.
            m_prev = m_sc[...]
            m_new = jnp.maximum(m_prev, jnp.max(logits, axis=1, keepdims=True))
            alpha = jnp.exp(m_prev - m_new)
            l_sc[...] = (l_sc[...] * alpha
                         + jnp.sum(jnp.exp(logits - m_new), axis=1, keepdims=True))
            m_sc[...] = m_new

            # Exactly one class tile contains each row's label -> accumulate the
            # target logit with a (b_tile,1) predicate, no full-tile reduce.
            lo = j * c_tile
            in_tile = jnp.logical_and(labels >= lo, labels < lo + c_tile)
            t_sc[...] = t_sc[...] + jnp.where(in_tile, tgt_logit, 0.0)

            @pl.when(j == nc - 1)
            def _fin():
                lse = m_sc[...] + jnp.log(l_sc[...])
                lse_sc[...] = lse
                # loss_row = -log_softmax(logits)[target]; the second log_softmax
                # that CrossEntropyLoss applies to log-probs is an exact identity.
                loss_ref[...] = lse - t_sc[...]

        @pl.when(p == 1)
        def _pass1():
            # Final log-probs written straight to HBM.  The target logit is
            # reused from t_sc, so no per-element margin math on this sweep.
            logits = jnp.where(is_tgt, t_sc[...], s * cos)
            out_ref[...] = logits - lse_sc[...]

    return kernel


def aamsoftmax_forward(x, weight, label, *, m=0.2, s=30.0):
    """x: (B, H) f32, weight: (C, H) f32, label: (B,) int.
    Returns (loss scalar, log_softmax output (B, C)) like the PyTorch module."""
    x = jnp.asarray(x, jnp.float32)
    weight = jnp.asarray(weight, jnp.float32)
    B, H = x.shape
    C, Hw = weight.shape
    assert Hw == H

    cos_m = math.cos(m)
    sin_m = math.sin(m)
    th = math.cos(math.pi - m)
    mm = math.sin(math.pi - m) * m

    # ---- tiling ----------------------------------------------------------
    # Batch tile: fill the MXU M dim, but keep >= 2 batch tiles when possible
    # so both v7x TensorCores receive work on the "parallel" batch axis.
    if B >= 512:
        b_tile = 256
    elif B >= 32:
        b_tile = min(256, _round_up((B + 1) // 2, 16))
    else:
        b_tile = _round_up(max(B, 1), 16)
    nb = pl.cdiv(B, b_tile)
    B_pad = nb * b_tile

    c_tile = min(1024, _round_up(C, 128))
    nc = pl.cdiv(C, c_tile)
    C_pad = nc * c_tile

    # ---- host-side prep (hoisted out of the hot loop) ----------------------
    # F.normalize(weight) once; transpose to (H, C_pad) bf16, lane-dense in C.
    w_n = weight / jnp.maximum(
        jnp.sqrt(jnp.sum(weight * weight, axis=1, keepdims=True)), 1e-12)
    wt = jnp.zeros((H, C_pad), jnp.bfloat16).at[:, :C].set(
        w_n.T.astype(jnp.bfloat16))

    # F.normalize(x) once (f32 math), fed to the MXU as bf16.
    x_n = x / jnp.maximum(
        jnp.sqrt(jnp.sum(x * x, axis=1, keepdims=True)), 1e-12)
    x_pad = jnp.zeros((B_pad, H), jnp.bfloat16).at[:B].set(
        x_n.astype(jnp.bfloat16))

    lbl = jnp.zeros((B_pad, 1), jnp.int32).at[:B, 0].set(
        jnp.asarray(label, jnp.int32).reshape(-1))

    kernel = _make_kernel(C, C_pad, float(s), cos_m, sin_m, th, mm,
                          b_tile, c_tile)

    logp_pad, loss_rows = pl.pallas_call(
        kernel,
        out_shape=(
            jax.ShapeDtypeStruct((B_pad, C_pad), jnp.float32),  # log-probs
            jax.ShapeDtypeStruct((B_pad, 1), jnp.float32),      # per-row NLL
        ),
        grid_spec=pltpu.PrefetchScalarGridSpec(
            num_scalar_prefetch=0,
            grid=(nb, 2, nc),        # (batch tile, pass, class tile)
            in_specs=[
                pl.BlockSpec((b_tile, H), lambda i, p, j: (i, 0)),
                # weight stream; streamed once per pass per batch tile.
                pl.BlockSpec((H, c_tile), lambda i, p, j: (0, j)),
                pl.BlockSpec((b_tile, 1), lambda i, p, j: (i, 0)),
            ],
            out_specs=(
                # pass 0 parks on class block 0 (never flushed mid-pass);
                # pass 1 writes each (i, j) block exactly once.
                pl.BlockSpec((b_tile, c_tile), lambda i, p, j: (i, j * p)),
                pl.BlockSpec((b_tile, 1), lambda i, p, j: (i, 0)),
            ),
            scratch_shapes=[
                pltpu.VMEM((b_tile, 1), jnp.float32),    # running max
                pltpu.VMEM((b_tile, 1), jnp.float32),    # running sum exp
                pltpu.VMEM((b_tile, 1), jnp.float32),    # target logit s*phi
                pltpu.VMEM((b_tile, 1), jnp.float32),    # logsumexp
            ]),
        compiler_params=pltpu.CompilerParams(
            dimension_semantics=("parallel", "arbitrary", "arbitrary")),
    )(x_pad, wt, lbl)

    output = logp_pad[:B, :C]
    # Final O(B) mean over valid rows (tiny, plain XLA).
    # TODO(synk): optional per-class cross_entropy_weight from __init__ is not
    # implemented (the reference forward uses the unweighted mean).
    loss = jnp.sum(loss_rows[:B, 0]) / B
    return loss, output


def _reference(x, weight, label, m, s):
    """Pure-JAX mirror of the PyTorch module (same bf16 MXU inputs as kernel)."""
    cos_m = math.cos(m)
    sin_m = math.sin(m)
    th = math.cos(math.pi - m)
    mm = math.sin(math.pi - m) * m
    x_n = x / jnp.maximum(
        jnp.sqrt(jnp.sum(x * x, axis=1, keepdims=True)), 1e-12)
    w_n = weight / jnp.maximum(
        jnp.sqrt(jnp.sum(weight * weight, axis=1, keepdims=True)), 1e-12)
    cosine = jnp.dot(x_n.astype(jnp.bfloat16), w_n.T.astype(jnp.bfloat16),
                     preferred_element_type=jnp.float32)
    sine = jnp.sqrt(jnp.clip(1.0 - cosine * cosine, 0.0, 1.0))
    phi = cosine * cos_m - sine * sin_m
    phi = jnp.where(cosine - th > 0, phi, cosine - mm)
    one_hot = jax.nn.one_hot(label, weight.shape[0], dtype=jnp.float32)
    logits = (one_hot * phi + (1.0 - one_hot) * cosine) * s
    output = jax.nn.log_softmax(logits, axis=1)
    logp2 = jax.nn.log_softmax(output, axis=1)     # CE re-applies log_softmax
    loss = jnp.mean(-jnp.sum(one_hot * logp2, axis=1))
    return loss, output


if __name__ == "__main__":
    # Small shapes consistent with the module: batch=8, hidden_size=64, n_class=16.
    B, H, C = 8, 64, 16

    key = jax.random.PRNGKey(0)
    kx, kw, kl = jax.random.split(key, 3)

    x = jax.random.normal(kx, (B, H), dtype=jnp.float32)

    # Deterministic xavier_normal_-style init: std = sqrt(2 / (fan_in + fan_out)).
    xavier_std = math.sqrt(2.0 / (H + C))
    weight = jax.random.normal(kw, (C, H), dtype=jnp.float32) * xavier_std

    label = jax.random.randint(kl, (B,), 0, C, dtype=jnp.int32)

    loss, output = aamsoftmax_forward(x, weight, label, m=0.2, s=30.0)
    jax.block_until_ready((loss, output))

    assert output.shape == (B, C)
    assert loss.shape == ()
    assert bool(jnp.isfinite(loss))
    # Rows of exp(log_softmax) must sum to 1.
    assert bool(jnp.allclose(jnp.sum(jnp.exp(output), axis=1), 1.0, atol=1e-3))

    ref_loss, ref_out = _reference(x, weight, label, 0.2, 30.0)
    assert bool(jnp.allclose(loss, ref_loss, atol=2e-2, rtol=1e-3))
    assert bool(jnp.allclose(output, ref_out, atol=2e-2, rtol=1e-3))

    print("KERNEL_OK")
</pallas_src>

<mosaic_0001>
module attributes {stable_mosaic.version = 11 : i64} {
  func.func @kernel(%arg0: i32, %arg1: i32, %arg2: i32, %arg3: memref<16x64xbf16, #tpu.memory_space<vmem>>, %arg4: memref<64x128xbf16, #tpu.memory_space<vmem>>, %arg5: memref<16x1xi32, #tpu.memory_space<vmem>>, %arg6: memref<16x128xf32, #tpu.memory_space<vmem>>, %arg7: memref<16x1xf32, #tpu.memory_space<vmem>>, %arg8: memref<16x1xf32, #tpu.memory_space<vmem>>, %arg9: memref<16x1xf32, #tpu.memory_space<vmem>>, %arg10: memref<16x1xf32, #tpu.memory_space<vmem>>, %arg11: memref<16x1xf32, #tpu.memory_space<vmem>>) attributes {dimension_semantics = [#tpu.dimension_semantics<parallel>, #tpu.dimension_semantics<arbitrary>, #tpu.dimension_semantics<arbitrary>], iteration_bounds = array<i64: 1, 2, 1>, scalar_prefetch = 0 : i64, scratch_operands = 4 : i64, tpu.core_type = #tpu.core_type<tc>, window_params = [{transform_indices = @transform_0, window_bounds = array<i64: 16, 64>}, {transform_indices = @transform_1, window_bounds = array<i64: 64, 128>}, {transform_indices = @transform_2, window_bounds = array<i64: 16, 1>}, {transform_indices = @transform_3, window_bounds = array<i64: 16, 128>}, {transform_indices = @transform_4, window_bounds = array<i64: 16, 1>}]} {
    %c0_i32 = arith.constant 0 : i32
    %0 = arith.cmpi eq, %arg1, %c0_i32 : i32
    %c0_i32_0 = arith.constant 0 : i32
    %1 = arith.cmpi eq, %arg2, %c0_i32_0 : i32
    %2 = arith.andi %0, %1 : i1
    %3 = arith.extui %2 : i1 to i32
    %c0_i32_1 = arith.constant 0 : i32
    %4 = arith.cmpi ne, %3, %c0_i32_1 : i32
    scf.if %4 {
      %cst_10 = arith.constant 0xFF800000 : f32
      %21 = vector.broadcast %cst_10 : f32 to vector<16x1xf32>
      %c0_11 = arith.constant 0 : index
      %c0_12 = arith.constant 0 : index
      %22 = vector.load %arg8[%c0_11, %c0_12] : memref<16x1xf32, #tpu.memory_space<vmem>>, vector<16x1xf32>
      tpu.vector_store %arg8[%c0_11, %c0_12], %21 {strides = array<i32>} : memref<16x1xf32, #tpu.memory_space<vmem>>, vector<16x1xf32>,
      %cst_13 = arith.constant 0.000000e+00 : f32
      %23 = vector.broadcast %cst_13 : f32 to vector<16x1xf32>
      %c0_14 = arith.constant 0 : index
      %c0_15 = arith.constant 0 : index
      %24 = vector.load %arg9[%c0_14, %c0_15] : memref<16x1xf32, #tpu.memory_space<vmem>>, vector<16x1xf32>
      tpu.vector_store %arg9[%c0_14, %c0_15], %23 {strides = array<i32>} : memref<16x1xf32, #tpu.memory_space<vmem>>, vector<16x1xf32>,
      %cst_16 = arith.constant 0.000000e+00 : f32
      %25 = vector.broadcast %cst_16 : f32 to vector<16x1xf32>
      %c0_17 = arith.constant 0 : index
      %c0_18 = arith.constant 0 : index
      %26 = vector.load %arg10[%c0_17, %c0_18] : memref<16x1xf32, #tpu.memory_space<vmem>>, vector<16x1xf32>
      tpu.vector_store %arg10[%c0_17, %c0_18], %25 {strides = array<i32>} : memref<16x1xf32, #tpu.memory_space<vmem>>, vector<16x1xf32>,
    } else {
    }
    %c0 = arith.constant 0 : index
    %c0_2 = arith.constant 0 : index
    %5 = vector.load %arg3[%c0, %c0_2] : memref<16x64xbf16, #tpu.memory_space<vmem>>, vector<16x64xbf16>
    %c0_3 = arith.constant 0 : index
    %c0_4 = arith.constant 0 : index
    %6 = vector.load %arg4[%c0_3, %c0_4] : memref<64x128xbf16, #tpu.memory_space<vmem>>, vector<64x128xbf16>
    %cst = arith.constant dense<0.000000e+00> : vector<16x128xf32>
    %7 = tpu.matmul %5, %6, %cst {dimension_numbers = #tpu.dot_dimension_numbers<[1], [0], [0], [1], [0, 0, 1, 1], [], []>} : vector<16x64xbf16>, vector<64x128xbf16>, vector<16x128xf32> -> vector<16x128xf32>
    %c0_5 = arith.constant 0 : index
    %c0_6 = arith.constant 0 : index
    %8 = vector.load %arg5[%c0_5, %c0_6] : memref<16x1xi32, #tpu.memory_space<vmem>>, vector<16x1xi32>
    %9 = tpu.iota {dimensions = array<i32: 1>} : vector<16x128xi32>
    %c128_i32 = arith.constant 128 : i32
    %10 = arith.muli %arg2, %c128_i32 : i32
    %11 = vector.broadcast %10 : i32 to vector<16x128xi32>
    %12 = arith.addi %9, %11 : vector<16x128xi32>
    %13 = vector.broadcast %8 : vector<16x1xi32> to vector<16x128xi32>
    %14 = arith.cmpi eq, %12, %13 : vector<16x128xi32>
    %c0_i32_7 = arith.constant 0 : i32
    %15 = arith.cmpi eq, %arg1, %c0_i32_7 : i32
    %16 = arith.extui %15 : i1 to i32
    %c0_i32_8 = arith.constant 0 : i32
    %17 = arith.cmpi ne, %16, %c0_i32_8 : i32
    scf.if %17 {
      %cst_10 = arith.constant 0.000000e+00 : f32
      %21 = vector.broadcast %cst_10 : f32 to vector<16x128xf32>
      %22 = arith.select %14, %7, %21 : vector<16x128xi1>, vector<16x128xf32>
      %cst_11 = arith.constant dense<0.000000e+00> : vector<16xf32>
      %23 = vector.multi_reduction <add>, %22, %cst_11 [1] : vector<16x128xf32> to vector<16xf32>
      %24 = vector.shape_cast %23 : vector<16xf32> to vector<16x1xf32>
      %25 = arith.mulf %24, %24 : vector<16x1xf32>
      %cst_12 = arith.constant 1.000000e+00 : f32
      %26 = vector.broadcast %cst_12 : f32 to vector<16x1xf32>
      %27 = arith.subf %26, %25 : vector<16x1xf32>
      %cst_13 = arith.constant 0.000000e+00 : f32
      %cst_14 = arith.constant 1.000000e+00 : f32
      %28 = vector.broadcast %cst_13 : f32 to vector<16x1xf32>
      %29 = arith.maximumf %28, %27 : vector<16x1xf32>
      %30 = vector.broadcast %cst_14 : f32 to vector<16x1xf32>
      %31 = arith.minimumf %30, %29 : vector<16x1xf32>
      %32 = math.sqrt %31 : vector<16x1xf32>
      %cst_15 = arith.constant 0.980066597 : f32
      %33 = vector.broadcast %cst_15 : f32 to vector<16x1xf32>
      %34 = arith.mulf %24, %33 : vector<16x1xf32>
      %cst_16 = arith.constant 0.198669329 : f32
      %35 = vector.broadcast %cst_16 : f32 to vector<16x1xf32>
      %36 = arith.mulf %32, %35 : vector<16x1xf32>
      %37 = arith.subf %34, %36 : vector<16x1xf32>
      %cst_17 = arith.constant -0.980066597 : f32
      %38 = vector.broadcast %cst_17 : f32 to vector<16x1xf32>
      %39 = arith.subf %24, %38 : vector<16x1xf32>
      %cst_18 = arith.constant 0.000000e+00 : f32
      %40 = vector.broadcast %cst_18 : f32 to vector<16x1xf32>
      %41 = arith.cmpf ogt, %39, %40 : vector<16x1xf32>
      %cst_19 = arith.constant 0.0397338644 : f32
      %42 = vector.broadcast %cst_19 : f32 to vector<16x1xf32>
      %43 = arith.subf %24, %42 : vector<16x1xf32>
      %44 = arith.select %41, %37, %43 : vector<16x1xi1>, vector<16x1xf32>
      %cst_20 = arith.constant 3.000000e+01 : f32
      %45 = vector.broadcast %cst_20 : f32 to vector<16x1xf32>
      %46 = arith.mulf %45, %44 : vector<16x1xf32>
      %cst_21 = arith.constant 3.000000e+01 : f32
      %47 = vector.broadcast %cst_21 : f32 to vector<16x128xf32>
      %48 = arith.mulf %47, %7 : vector<16x128xf32>
      %49 = vector.shape_cast %46 : vector<16x1xf32> to vector<16x1xf32>
      %50 = vector.broadcast %49 : vector<16x1xf32> to vector<16x128xf32>
      %51 = arith.select %14, %50, %48 : vector<16x128xi1>, vector<16x128xf32>
      %c16_i32 = arith.constant 16 : i32
      %52 = vector.broadcast %c16_i32 : i32 to vector<16x128xi32>
      %53 = arith.cmpi slt, %12, %52 : vector<16x128xi32>
      %cst_22 = arith.constant -1.000000e+30 : f32
      %54 = vector.broadcast %cst_22 : f32 to vector<16x128xf32>
      %55 = arith.select %53, %51, %54 : vector<16x128xi1>, vector<16x128xf32>
      %c0_23 = arith.constant 0 : index
      %c0_24 = arith.constant 0 : index
      %56 = vector.load %arg8[%c0_23, %c0_24] : memref<16x1xf32, #tpu.memory_space<vmem>>, vector<16x1xf32>
      %cst_25 = arith.constant dense<0xFF800000> : vector<16xf32>
      %57 = vector.multi_reduction <maximumf>, %55, %cst_25 [1] : vector<16x128xf32> to vector<16xf32>
      %58 = vector.shape_cast %57 : vector<16xf32> to vector<16x1xf32>
      %59 = arith.maximumf %56, %58 : vector<16x1xf32>
      %60 = arith.subf %56, %59 : vector<16x1xf32>
      %61 = math.exp %60 : vector<16x1xf32>
      %c0_26 = arith.constant 0 : index
      %c0_27 = arith.constant 0 : index
      %62 = vector.load %arg9[%c0_26, %c0_27] : memref<16x1xf32, #tpu.memory_space<vmem>>, vector<16x1xf32>
      %63 = arith.mulf %62, %61 : vector<16x1xf32>
      %64 = vector.broadcast %59 : vector<16x1xf32> to vector<16x128xf32>
      %65 = arith.subf %55, %64 : vector<16x128xf32>
      %66 = math.exp %65 : vector<16x128xf32>
      %cst_28 = arith.constant dense<0.000000e+00> : vector<16xf32>
      %67 = vector.multi_reduction <add>, %66, %cst_28 [1] : vector<16x128xf32> to vector<16xf32>
      %68 = vector.shape_cast %67 : vector<16xf32> to vector<16x1xf32>
      %69 = arith.addf %63, %68 : vector<16x1xf32>
      %c0_29 = arith.constant 0 : index
      %c0_30 = arith.constant 0 : index
      %70 = vector.load %arg9[%c0_29, %c0_30] : memref<16x1xf32, #tpu.memory_space<vmem>>, vector<16x1xf32>
      tpu.vector_store %arg9[%c0_29, %c0_30], %69 {strides = array<i32>} : memref<16x1xf32, #tpu.memory_space<vmem>>, vector<16x1xf32>,
      %c0_31 = arith.constant 0 : index
      %c0_32 = arith.constant 0 : index
      %71 = vector.load %arg8[%c0_31, %c0_32] : memref<16x1xf32, #tpu.memory_space<vmem>>, vector<16x1xf32>
      tpu.vector_store %arg8[%c0_31, %c0_32], %59 {strides = array<i32>} : memref<16x1xf32, #tpu.memory_space<vmem>>, vector<16x1xf32>,
      %c128_i32_33 = arith.constant 128 : i32
      %72 = arith.muli %arg2, %c128_i32_33 : i32
      %73 = vector.broadcast %72 : i32 to vector<16x1xi32>
      %74 = arith.cmpi sge, %8, %73 : vector<16x1xi32>
      %c128_i32_34 = arith.constant 128 : i32
      %75 = arith.addi %72, %c128_i32_34 : i32
      %76 = vector.broadcast %75 : i32 to vector<16x1xi32>
      %77 = arith.cmpi slt, %8, %76 : vector<16x1xi32>
      %78 = arith.andi %74, %77 : vector<16x1xi1>
      %c0_35 = arith.constant 0 : index
      %c0_36 = arith.constant 0 : index
      %79 = vector.load %arg10[%c0_35, %c0_36] : memref<16x1xf32, #tpu.memory_space<vmem>>, vector<16x1xf32>
      %cst_37 = arith.constant 0.000000e+00 : f32
      %80 = vector.broadcast %cst_37 : f32 to vector<16x1xf32>
      %81 = arith.select %78, %46, %80 : vector<16x1xi1>, vector<16x1xf32>
      %82 = arith.addf %79, %81 : vector<16x1xf32>
      %c0_38 = arith.constant 0 : index
      %c0_39 = arith.constant 0 : index
      %83 = vector.load %arg10[%c0_38, %c0_39] : memref<16x1xf32, #tpu.memory_space<vmem>>, vector<16x1xf32>
      tpu.vector_store %arg10[%c0_38, %c0_39], %82 {strides = array<i32>} : memref<16x1xf32, #tpu.memory_space<vmem>>, vector<16x1xf32>,
      %c0_i32_40 = arith.constant 0 : i32
      %84 = arith.cmpi eq, %arg2, %c0_i32_40 : i32
      %85 = arith.extui %84 : i1 to i32
      %c0_i32_41 = arith.constant 0 : i32
      %86 = arith.cmpi ne, %85, %c0_i32_41 : i32
      scf.if %86 {
        %c0_42 = arith.constant 0 : index
        %c0_43 = arith.constant 0 : index
        %87 = vector.load %arg8[%c0_42, %c0_43] : memref<16x1xf32, #tpu.memory_space<vmem>>, vector<16x1xf32>
        %c0_44 = arith.constant 0 : index
        %c0_45 = arith.constant 0 : index
        %88 = vector.load %arg9[%c0_44, %c0_45] : memref<16x1xf32, #tpu.memory_space<vmem>>, vector<16x1xf32>
        %89 = math.log %88 : vector<16x1xf32>
        %90 = arith.addf %87, %89 : vector<16x1xf32>
        %c0_46 = arith.constant 0 : index
        %c0_47 = arith.constant 0 : index
        %91 = vector.load %arg11[%c0_46, %c0_47] : memref<16x1xf32, #tpu.memory_space<vmem>>, vector<16x1xf32>
        tpu.vector_store %arg11[%c0_46, %c0_47], %90 {strides = array<i32>} : memref<16x1xf32, #tpu.memory_space<vmem>>, vector<16x1xf32>,
        %c0_48 = arith.constant 0 : index
        %c0_49 = arith.constant 0 : index
        %92 = vector.load %arg10[%c0_48, %c0_49] : memref<16x1xf32, #tpu.memory_space<vmem>>, vector<16x1xf32>
        %93 = arith.subf %90, %92 : vector<16x1xf32>
        %c0_50 = arith.constant 0 : index
        %c0_51 = arith.constant 0 : index
        %94 = vector.load %arg7[%c0_50, %c0_51] : memref<16x1xf32, #tpu.memory_space<vmem>>, vector<16x1xf32>
        tpu.vector_store %arg7[%c0_50, %c0_51], %93 {strides = array<i32>} : memref<16x1xf32, #tpu.memory_space<vmem>>, vector<16x1xf32>,
      } else {
      }
    } else {
    }
    %c1_i32 = arith.constant 1 : i32
    %18 = arith.cmpi eq, %arg1, %c1_i32 : i32
    %19 = arith.extui %18 : i1 to i32
    %c0_i32_9 = arith.constant 0 : i32
    %20 = arith.cmpi ne, %19, %c0_i32_9 : i32
    scf.if %20 {
      %c0_10 = arith.constant 0 : index
      %c0_11 = arith.constant 0 : index
      %21 = vector.load %arg10[%c0_10, %c0_11] : memref<16x1xf32, #tpu.memory_space<vmem>>, vector<16x1xf32>
      %cst_12 = arith.constant 3.000000e+01 : f32
      %22 = vector.broadcast %cst_12 : f32 to vector<16x128xf32>
      %23 = arith.mulf %22, %7 : vector<16x128xf32>
      %24 = vector.shape_cast %21 : vector<16x1xf32> to vector<16x1xf32>
      %25 = vector.broadcast %24 : vector<16x1xf32> to vector<16x128xf32>
      %26 = arith.select %14, %25, %23 : vector<16x128xi1>, vector<16x128xf32>
      %c0_13 = arith.constant 0 : index
      %c0_14 = arith.constant 0 : index
      %27 = vector.load %arg11[%c0_13, %c0_14] : memref<16x1xf32, #tpu.memory_space<vmem>>, vector<16x1xf32>
      %28 = vector.broadcast %27 : vector<16x1xf32> to vector<16x128xf32>
      %29 = arith.subf %26, %28 : vector<16x128xf32>
      %c0_15 = arith.constant 0 : index
      %c0_16 = arith.constant 0 : index
      %30 = vector.load %arg6[%c0_15, %c0_16] : memref<16x128xf32, #tpu.memory_space<vmem>>, vector<16x128xf32>
      tpu.vector_store %arg6[%c0_15, %c0_16], %29 {strides = array<i32>} : memref<16x128xf32, #tpu.memory_space<vmem>>, vector<16x128xf32>,
    } else {
    }
    return
  }
  func.func @transform_0(%arg0: i32, %arg1: i32, %arg2: i32) -> (i32, i32) {
    %c0_i32 = arith.constant 0 : i32
    %c0_i32_0 = arith.constant 0 : i32
    return %arg0, %c0_i32 : i32, i32
  }
  func.func @transform_1(%arg0: i32, %arg1: i32, %arg2: i32) -> (i32, i32) {
    %c0_i32 = arith.constant 0 : i32
    %c0_i32_0 = arith.constant 0 : i32
    return %c0_i32, %arg2 : i32, i32
  }
  func.func @transform_2(%arg0: i32, %arg1: i32, %arg2: i32) -> (i32, i32) {
    %c0_i32 = arith.constant 0 : i32
    %c0_i32_0 = arith.constant 0 : i32
    return %arg0, %c0_i32 : i32, i32
  }
  func.func @transform_3(%arg0: i32, %arg1: i32, %arg2: i32) -> (i32, i32) {
    %0 = arith.muli %arg2, %arg1 : i32
    %c0_i32 = arith.constant 0 : i32
    return %arg0, %0 : i32, i32
  }
  func.func @transform_4(%arg0: i32, %arg1: i32, %arg2: i32) -> (i32, i32) {
    %c0_i32 = arith.constant 0 : i32
    %c0_i32_0 = arith.constant 0 : i32
    return %arg0, %c0_i32 : i32, i32
  }
}

</mosaic_0001>

<bundles_post_ra>
// kernel: tpu_custom_call.1
= control target key start
LH: loop header
LB: loop body
LE: loop exit
PB: predicated region body
PF: predicated region fallthrough
CT: control target
= control target key end

     0   :  { %10 = vsyncpa [#allocation7], 0  ;;  %s1152_s0 = inlined_call_operand.vmem [shape: bf16[16,64], index: 0, kind: input, shape index: {}]   ;;  %s1153_s1 = inlined_call_operand.hbm [shape: bf16[64,128], index: 1, kind: input, shape index: {}]   ;;  %s1154_s2 = inlined_call_operand.vmem [shape: s32[16,1], index: 2, kind: input, shape index: {}]   ;;  %s1155_s3 = inlined_call_operand.hbm [shape: f32[16,128], index: 3, kind: output, shape index: {0}]   ;;  %s1156_s4 = inlined_call_operand.vmem [shape: f32[16,1], index: 4, kind: output, shape index: {1}]  }
   0x1   :  { %11 = vsyncpa [#allocation8], 0 }
   0x2   :  { %13 = vsyncpa [#allocation8 + $0x1], 0  ;;  %s973_s15 = smov 0   ;;  %s975_s16 = smov 0  }
   0x3   :  { %s977_s17 = smov 0  }
   0x4 LB: > { %s720_s18 = sadd.s32 4294967295, %s933_s17   ;;  %s721_s19 = sadd.s32 4294967294, %s933_s17   ;;  %s933_s17 = sphi %s977_s17, %s19_s17   ;;  %s929_s16 = sphi %s975_s16, %s1167_s16   ;;  %s925_s15 = sphi %s973_s15, %s1166_s15  }
   0x5   : > { %s34_s20 = sadd.s32 1, %s929_s16  ;;  %p722_p0 = scmp.ge.s32.totalorder %s933_s17, 1 }
   0x6   : > { %p36_p1 = scmp.ge.s32.totalorder %s34_s20, 2  ;;  %p177_p2 = scmp.lt.s32.totalorder %s933_s17, 3 }
   0x7   : > { %p995_p3 = scmp.eq.s32.totalorder %s720_s18, 0  ;;  %s935_s23 = smov [#allocation6]  }
   0x8   : > { %s1169_s20 = smov (%p36_p1, %s34_s20), 0  ;;  %p1001_p4 = pnand %p722_p0, %p177_p2 }
   0x9   : > { %s1160_s21 = scalar_select %p995_p3, 1, 0 }
   0xa   : > { %s1161_s22 = scalar_select %p1001_p4, 1, 0 }
   0xb   : > { %s200_s24 = sshll.u32 %s935_s23, 4  ;;  %p773_p5 = pneg %p1001_p4  ;;  %s201_s24 = int_to_ptr.vmem [resolvable:$true] %s200_s24 }
   0xc   : > { %s849_s28 = scalar_lea.hbm %s1153_s1, 512 }
   0xd   : > { %p1009_p6 = pnand %p995_p3, %p773_p5  ;;  %p850_p7 = scmp.ne.s32.totalorder %s1153_s1, %s849_s28 }
   0xe   : > { %p856_p11 = scmp.lt.u32.totalorder %s849_s28, %s1153_s1 }
   0xf   : > { %p851_p8 = pneg %p1009_p6 }
  0x11   : > { %p852_p9 = pnand %p851_p8, %p850_p7 }
  0x13   : > { %p853_p10 = pneg %p852_p9 }
  0x15   : > { %p858_p12 = pnand %p856_p11, %p853_p10 }
  0x17   : > { %861 = shalt.err (!%p858_p12)
}
  0x18   : > { %s862_s7 = scalar_lea.vmem %s201_s24, 512  ;;  %p870_p2 = scmp.lt.s32.totalorder %s201_s24, %s201_s24 }
  0x19   : > { %p863_p13 = scmp.ne.s32.totalorder %s201_s24, %s862_s7  ;;  %p871_p5 = scmp.lt.s32.totalorder %s862_s7, %s862_s7 }
  0x1b   : > { %p865_p0 = pnand %p863_p13, %p851_p8  ;;  %p872_p3 = por %p871_p5, %p870_p2 }
  0x1d   : > { %p866_p1 = pneg %p865_p0 }
  0x1f   : > { %p873_p4 = pnand %p872_p3, %p866_p1 }
  0x21   : > { %876 = shalt.err (!%p873_p4)
}
  0x22   : > { %s936_s8 = smov 64   ;;  %s937_s9 = smov 4  }
  0x23   : > { %776 = dma.hbm_to_vmem [thread:$0]  (!%p1009_p6), %s1153_s1, 512, %s201_s24, [#allocation7], %s936_s8, %s936_s8, %s937_s9  }
  0x24   : > { %p1163_p7 = scmp.ne.s32.totalorder %s1161_s22, 0 }
  0x25   : > { %p1164_p9 = scmp.ne.s32.totalorder (!%p1163_p7), %s1160_s21, 0 }
  0x26   : > { %225 = sbr.rel (%p1163_p7) target bundleno = 1083 (0x43b), region = 32 }
  0x2d   : > { %916 = dma.done.wait (%p1164_p9), [#allocation7], 512  }
  0x2e   : > { %918 = vsyncadd (%p1164_p9), [#allocation7], 4294966784  ;;  %p282_p3 = scmp.eq.s32.totalorder %s925_s15, 0 }
  0x2f   : > { %vm288_vm0 = vcmask (%p282_p3), 7168   ;;  %v938_v0 = vmov (%p282_p3), -inf   ;;  %v939_v1 = vmov (%p282_p3), 0.0  }
  0x30   : > { %287 = sbr.rel (!%p282_p3) target bundleno = 55 (0x37), region = 40  ;;  %289 = vst.msk [vmem:[#allocation2] sm:$0xff] (%p282_p3), %vm288_vm0, %v938_v0  ;;  %290 = vst.msk [vmem:[#allocation2 + $0x8] sm:$0xff] (%p282_p3), %vm288_vm0, %v938_v0 }
  0x31   : > { %291 = vst.msk [vmem:[#allocation3] sm:$0xff] (%p282_p3), %vm288_vm0, %v939_v1  ;;  %292 = vst.msk [vmem:[#allocation3 + $0x8] sm:$0xff] (%p282_p3), %vm288_vm0, %v939_v1 }
  0x32   : > { %293 = vst.msk [vmem:[#allocation4] sm:$0xff] (%p282_p3), %vm288_vm0, %v939_v1  ;;  %294 = vst.msk [vmem:[#allocation4 + $0x8] sm:$0xff] (%p282_p3), %vm288_vm0, %v939_v1 }
  0x37 PF: > { %v824_v2 = vld [vmem:[#allocation6] sm:$0xff]   ;;  %v940_v3 = vmov 0.0   ;;  %v825_v4 = vld [vmem:[#allocation6 + $0x8] sm:$0xff]   ;;  %vm941_vm1 = vmmov 0   ;;  %v942_v5 = vmov 0   ;;  %v826_v7 = vld [vmem:[#allocation6 + $0x10] sm:$0xff]   ;;  %v381_v11 = vlaneseq }
  0x38   : > { %753 = vmatprep.subr.bf16.mxu0 %v940_v3  ;;  %761 = vmatprep.mubr.msk.bf16.mxu0 %vm941_vm1, %v940_v3  ;;  %v1039_v6 = vld [vmem:[%s1154_s2] sm:$0xff]  ;;  %v1045_v8 = vld [vmem:[%s1154_s2 + $0x8] sm:$0xff]  ;;  %v827_v9 = vld [vmem:[#allocation6 + $0x18] sm:$0xff]   ;;  %vm334_vm2 = vcmask 523264   ;;  %p735_p4 = scmp.ne.s32.totalorder %s925_s15, 0 }
  0x39   : > { %754 = vmatpush3.bf16.msra.mxu0 %v824_v2  ;;  %823 = vset.pattern.permute.xlu0 %v942_v5  ;;  %v828_v10 = vld [vmem:[%s1152_s0] sm:$0xff]   ;;  %v1051_v12 = vand.u32 127, %v381_v11  ;;  %vm493_vm7 = vcmp.ge.s32.totalorder (!%p735_p4), %v1039_v6, 0  ;;  %vm497_vm8 = vcmp.lt.s32.totalorder (!%p735_p4), %v1039_v6, 128  ;;  %vm488_vm14 = vcmask (!%p735_p4), 7168   ;;  %v502_v62 = vld [vmem:[#allocation4 + $0x8] sm:$0xff] (!%p735_p4) }
  0x3a   : > { %755 = vmatprep.subr.bf16.mxu0 %v940_v3  ;;  %387 = vperm.xlu0 %823, %v1039_v6   ;;  %vm499_vm13 = vmand (!%p735_p4), %vm493_vm7, %vm497_vm8  ;;  %v501_v52 = vld [vmem:[#allocation4] sm:$0xff] (!%p735_p4)  ;;  %vm494_vm15 = vcmp.ge.s32.totalorder (!%p735_p4), %v1045_v8, 0  ;;  %vm498_vm0 = vcmp.lt.s32.totalorder (!%p735_p4), %v1045_v8, 128 }
  0x3b   : > { %vm445_vm12 = vcmp.lt.s32.totalorder (!%p735_p4), %v1051_v12, 16 }
  0x3d   : > { %756 = vmatpush3.bf16.msra.mxu0 %v825_v4  ;;  %v448_v4 = vld [vmem:[#allocation2] sm:$0xff] (!%p735_p4) }
  0x3e   : > { %757 = vmatprep.subr.bf16.mxu0 %v940_v3  ;;  %390 = vperm.xlu0 %823, %v1045_v8   ;;  %v449_v8 = vld [vmem:[#allocation2 + $0x8] sm:$0xff] (!%p735_p4) }
  0x41   : > { %758 = vmatpush3.bf16.msra.mxu0 %v826_v7 }
  0x42   : > { %759 = vmatprep.subr.bf16.mxu0 %v940_v3  ;;  %v943_v3 = vmov (!%p735_p4), 0  }
  0x43   : > { %829 = vset.pattern.permute.xlu0 (!%p735_p4), %v943_v3  ;;  %830 = vset.pattern.permute.xlu1 (!%p735_p4), %v943_v3 }
  0x45   : > { %760 = vmatpush3.bf16.msra.mxu0 %v827_v9 }
  0x48   : > { %762 = vmatmul.mubr.msk.bf16.vlgmr.msra.gmra.mrb[0].mxu0 %vm334_vm2, %v828_v10  ;;  %vm500_vm2 = vmand (!%p735_p4), %vm494_vm15, %vm498_vm0 }
  0xb9   : > { %v1053_v13 = vpop.permute.xlu0 %387 }
  0xba   : > { %vm392_vm3 = vcmp.eq.s32.totalorder %v1051_v12, %v1053_v13 }
  0xbd   : > { %v1057_v14 = vpop.permute.xlu0 %390 }
  0xbe   : > { %vm393_vm4 = vcmp.eq.s32.totalorder %v1051_v12, %v1057_v14 }
 0x118   : > { %396 = sbr.rel (%p735_p4) target bundleno = 920 (0x398), region = 44 }
 0x11b   : > { %v1061_v15 = vpop.f32.mrb[0].mxu0 }
 0x11c   : > { %v763_v16 = vpop.f32.mrb[1].mxu0  ;;  %v397_v19 = vsel (!%p735_p4), %vm392_vm3, %v1061_v15, 0.0  ;;  %v441_v45 = vmul.f32 (!%p735_p4), 30.0, %v1061_v15 }
 0x11d   : > { %v1063_v17 = vpop.f32.mrb[2].mxu0  ;;  %399 = vadd.xlane.f32.xlu0 (!%p735_p4), %v397_v19 }
 0x11e   : > { %v764_v18 = vpop.f32.mrb[3].mxu0  ;;  %v398_v20 = vsel (!%p735_p4), %vm393_vm4, %v1063_v17, 0.0  ;;  %v442_v59 = vmul.f32 (!%p735_p4), 30.0, %v1063_v17 }
 0x121   : > { %401 = vadd.xlane.f32.xlu0 %v398_v20 }
 0x1aa   : > { %v400_v21 = vpop.xlane.xlu0 %399 }
 0x1ab   : > { %v403_v22 = vmul.f32 %v400_v21, %v400_v21  ;;  %v736_v36 = vadd.f32 0.9800666, %v400_v21  ;;  %v425_v38 = vmul.f32 0.9800666, %v400_v21  ;;  %v738_v42 = vadd.f32 -0.039733864, %v400_v21 }
 0x1ad   : > { %v405_v23 = vsub.f32 1.0, %v403_v22  ;;  %vm433_vm11 = vcmp.gt.f32.partialorder %v736_v36, 0.0 }
 0x1ae   : > { %v402_v24 = vpop.xlane.xlu0 %401 }
 0x1af   : > { %v407_v25 = vmax.f32 %v405_v23, 0.0  ;;  %v404_v26 = vmul.f32 %v402_v24, %v402_v24  ;;  %v737_v47 = vadd.f32 0.9800666, %v402_v24  ;;  %v426_v49 = vmul.f32 0.9800666, %v402_v24 }
 0x1b0   : > { %v739_v54 = vadd.f32 -0.039733864, %v402_v24 }
 0x1b1   : > { %v409_v27 = vmin.f32 %v407_v25, 1.0  ;;  %v406_v28 = vsub.f32 1.0, %v404_v26  ;;  %vm434_vm1 = vcmp.gt.f32.partialorder %v737_v47, 0.0 }
 0x1b3   : > { %831 = vrsqrt.f32 %v409_v27  ;;  %v408_v29 = vmax.f32 %v406_v28, 0.0  ;;  %vm413_vm5 = vcmp.eq.f32.partialorder %v409_v27, inf  ;;  %v416_v33 = vand.u32 2147483648, %v409_v27  ;;  %v462_v28 = vld [vmem:[#allocation3] sm:$0xff] }
 0x1b4   : > { %vm415_vm6 = vcmp.eq.f32.partialorder %v409_v27, 0.0 }
 0x1b5   : > { %v410_v30 = vmin.f32 %v408_v29, 1.0 }
 0x1b7   : > { %833 = vrsqrt.f32 %v410_v30  ;;  %vm420_vm9 = vcmp.eq.f32.partialorder %v410_v30, inf  ;;  %v423_v43 = vand.u32 2147483648, %v410_v30  ;;  %vm422_vm10 = vcmp.eq.f32.partialorder %v410_v30, 0.0 }
 0x1bd   : > { %v832_v31 = vpop.eup %831 }
 0x1be   : > { %v412_v32 = vmul.f32 %v832_v31, %v409_v27 }
 0x1c0   : > { %v414_v34 = vsel %vm413_vm5, %v409_v27, %v412_v32 }
 0x1c1   : > { %v417_v35 = vsel %vm415_vm6, %v416_v33, %v414_v34  ;;  %v834_v37 = vpop.eup %833  ;;  %v463_v33 = vld [vmem:[#allocation3 + $0x8] sm:$0xff] }
 0x1c2   : > { %v427_v39 = vmul.f32 0.19866933, %v417_v35  ;;  %v419_v40 = vmul.f32 %v834_v37, %v410_v30 }
 0x1c4   : > { %v429_v41 = vsub.f32 %v425_v38, %v427_v39  ;;  %v421_v44 = vsel %vm420_vm9, %v410_v30, %v419_v40 }
 0x1c5   : > { %v424_v46 = vsel %vm422_vm10, %v423_v43, %v421_v44 }
 0x1c6   : > { %v437_v48 = vsel %vm433_vm11, %v429_v41, %v738_v42  ;;  %v428_v50 = vmul.f32 0.19866933, %v424_v46 }
 0x1c7   : > { %v439_v51 = vmul.f32 30.0, %v437_v48 }
 0x1c8   : > { %v430_v53 = vsub.f32 %v426_v49, %v428_v50 }
 0x1c9   : > { %v443_v55 = vsel %vm392_vm3, %v439_v51, %v441_v45  ;;  %v503_v56 = vsel %vm499_vm13, %v439_v51, 0.0 }
 0x1ca   : > { %v446_v57 = vsel %vm445_vm12, %v443_v55, -1e+30  ;;  %v505_v58 = vadd.f32 %v503_v56, %v501_v52  ;;  %v438_v60 = vsel %vm434_vm1, %v430_v53, %v739_v54 }
 0x1cb   : > { %450 = vmax.xlane.f32.xlu1 %v446_v57  ;;  %v440_v61 = vmul.f32 30.0, %v438_v60 }
 0x1cc   : > { %507 = vst.msk [vmem:[#allocation4] sm:$0xff] %vm488_vm14, %v505_v58 }
 0x1cd   : > { %v444_v63 = vsel %vm393_vm4, %v440_v61, %v442_v59  ;;  %v504_v0 = vsel %vm500_vm2, %v440_v61, 0.0 }
 0x1ce   : > { %v447_v1 = vsel %vm445_vm12, %v444_v63, -1e+30  ;;  %v506_v2 = vadd.f32 %v504_v0, %v502_v62 }
 0x1cf   : > { %452 = vmax.xlane.f32.xlu1 %v447_v1 }
 0x1d0   : > { %508 = vst.msk [vmem:[#allocation4 + $0x8] sm:$0xff] %vm488_vm14, %v506_v2 }
 0x1d3   : > { %v524_v43 = vld [vmem:[#allocation4] sm:$0xff] }
 0x1d7   : > { %v525_v49 = vld [vmem:[#allocation4 + $0x8] sm:$0xff] }
 0x258   : > { %v451_v5 = vpop.xlane.xlu1 %450 }
 0x259   : > { %v454_v6 = vmax.f32 %v448_v4, %v451_v5 }
 0x25b   : > { %v456_v7 = vsub.f32 %v448_v4, %v454_v6  ;;  %491 = vst.msk [vmem:[#allocation2] sm:$0xff] %vm488_vm14, %v454_v6  ;;  %468 = vperm.xlu0 %829, %v454_v6  }
 0x25c   : > { %v453_v9 = vpop.xlane.xlu1 %452 }
 0x25d   : > { %v455_v10 = vmax.f32 %v449_v8, %v453_v9  ;;  %v458_v25 = vmul.f32 1.442695, %v456_v7 }
 0x25f   : > { %v457_v11 = vsub.f32 %v449_v8, %v455_v10  ;;  %492 = vst.msk [vmem:[#allocation2 + $0x8] sm:$0xff] %vm488_vm14, %v455_v10  ;;  %473 = vperm.xlu1 %830, %v455_v10  }
 0x261   : > { %v460_v26 = vmul.f32 1.442695, %v457_v11 }
 0x262   : > { %v512_v41 = vld [vmem:[#allocation2] sm:$0xff] }
 0x266   : > { %v513_v47 = vld [vmem:[#allocation2 + $0x8] sm:$0xff] }
 0x2da   : > { %v469_v16 = vpop.permute.xlu0 %468 }
 0x2db   : > { %v476_v18 = vsub.f32 %v446_v57, %v469_v16 }
 0x2dd   : > { %v478_v19 = vmul.f32 1.442695, %v476_v18 }
 0x2de   : > { %v474_v20 = vpop.permute.xlu1 %473 }
 0x2df   : > { %835 = vpow2.f32 %v478_v19  ;;  %v477_v21 = vsub.f32 %v447_v1, %v474_v20 }
 0x2e1   : > { %v480_v22 = vmul.f32 1.442695, %v477_v21 }
 0x2e3   : > { %837 = vpow2.f32 %v480_v22 }
 0x2e4   : > { %839 = vpow2.f32 %v458_v25 }
 0x2e5   : > { %841 = vpow2.f32 %v460_v26 }
 0x2e9   : > { %v836_v23 = vpop.eup %835 }
 0x2ea   : > { %482 = vadd.xlane.f32.xlu1 %v836_v23 }
 0x2ed   : > { %v838_v24 = vpop.eup %837 }
 0x2ee   : > { %484 = vadd.xlane.f32.xlu0 %v838_v24  ;;  %v840_v27 = vpop.eup %839 }
 0x2ef   : > { %v464_v29 = vmul.f32 %v840_v27, %v462_v28  ;;  %v842_v31 = vpop.eup %841 }
 0x2f0   : > { %v465_v34 = vmul.f32 %v842_v31, %v463_v33 }
 0x377   : > { %v483_v30 = vpop.xlane.xlu1 %482 }
 0x378   : > { %v486_v32 = vadd.f32 %v483_v30, %v464_v29 }
 0x37a   : > { %489 = vst.msk [vmem:[#allocation3] sm:$0xff] %vm488_vm14, %v486_v32 }
 0x37b   : > { %v485_v35 = vpop.xlane.xlu0 %484 }
 0x37c   : > { %v487_v36 = vadd.f32 %v485_v35, %v465_v34 }
 0x37e   : > { %490 = vst.msk [vmem:[#allocation3 + $0x8] sm:$0xff] %vm488_vm14, %v487_v36 }
 0x381   : > { %v514_v37 = vld [vmem:[#allocation3] sm:$0xff] }
 0x382   : > { %843 = vlog2.f32 %v514_v37 }
 0x385   : > { %v515_v38 = vld [vmem:[#allocation3 + $0x8] sm:$0xff] }
 0x386   : > { %845 = vlog2.f32 %v515_v38 }
 0x38c   : > { %v844_v39 = vpop.eup %843 }
 0x38d   : > { %v517_v40 = vmul.f32 0.6931472, %v844_v39 }
 0x38f   : > { %v520_v42 = vadd.f32 %v517_v40, %v512_v41 }
 0x390   : > { %v846_v44 = vpop.eup %845 }
 0x391   : > { %522 = vst.msk [vmem:[#allocation5] sm:$0xff] %vm488_vm14, %v520_v42  ;;  %v526_v45 = vsub.f32 %v520_v42, %v524_v43  ;;  %v519_v46 = vmul.f32 0.6931472, %v846_v44 }
 0x393   : > { %528 = vst.msk [vmem:[%s1156_s4] sm:$0xff] %vm488_vm14, %v526_v45  ;;  %v521_v48 = vadd.f32 %v519_v46, %v513_v47 }
 0x395   : > { %523 = vst.msk [vmem:[#allocation5 + $0x8] sm:$0xff] %vm488_vm14, %v521_v48  ;;  %v527_v50 = vsub.f32 %v521_v48, %v525_v49 }
 0x397   : > { %529 = vst.msk [vmem:[%s1156_s4 + $0x8] sm:$0xff] %vm488_vm14, %v527_v50 }
 0x398 PF: > { %p740_p6 = scmp.ne.s32.totalorder %s925_s15, 1 }
 0x399   : > { %v550_v51 = vld [vmem:[#allocation5] sm:$0xff] (!%p740_p6)  ;;  %v534_v52 = vld [vmem:[#allocation4] sm:$0xff] (!%p740_p6)  ;;  %v944_v53 = vmov (!%p740_p6), 0   ;;  %v535_v55 = vld [vmem:[#allocation4 + $0x8] sm:$0xff] (!%p740_p6)  ;;  %v536_v56 = vmul.f32 (!%p740_p6), 30.0, %v1061_v15  ;;  %v537_v60 = vmul.f32 (!%p740_p6), 30.0, %v1063_v17 }
 0x39a   : > { %533 = sbr.rel (%p740_p6) target bundleno = 1059 (0x423), region = 52  ;;  %848 = vset.pattern.permute.xlu1 (!%p740_p6), %v944_v53  ;;  %847 = vset.pattern.permute.xlu0 (!%p740_p6), %v944_v53 }
 0x39b   : > { %554 = vperm.xlu1 (!%p740_p6), %848, %v550_v51   ;;  %540 = vperm.xlu0 (!%p740_p6), %847, %v534_v52  }
 0x39c   : > { %v551_v54 = vld [vmem:[#allocation5 + $0x8] sm:$0xff] (!%p740_p6) }
 0x39f   : > { %559 = vperm.xlu1 (!%p740_p6), %848, %v551_v54   ;;  %545 = vperm.xlu0 (!%p740_p6), %847, %v535_v55  }
 0x41a   : > { %v555_v57 = vpop.permute.xlu1 %554  ;;  %v541_v58 = vpop.permute.xlu0 %540 }
 0x41b   : > { %v548_v59 = vsel %vm392_vm3, %v541_v58, %v536_v56 }
 0x41c   : > { %v562_v61 = vsub.f32 %v548_v59, %v555_v57 }
 0x41e   : > { %564 = vst [vmem:[#allocation9] sm:$0xff] %v562_v61  ;;  %v560_v62 = vpop.permute.xlu1 %559  ;;  %v546_v63 = vpop.permute.xlu0 %545 }
 0x41f   : > { %v549_v0 = vsel %vm393_vm4, %v546_v63, %v537_v60 }
 0x420   : > { %v563_v1 = vsub.f32 %v549_v0, %v560_v62 }
 0x422   : > { %565 = vst [vmem:[#allocation9 + $0x8] sm:$0xff] %v563_v1 }
 0x423 PF: > { %p1118_p8 = scmp.eq.s32.totalorder %s720_s18, 1  ;;  %s945_s28 = smov [#allocation9]  }
 0x424   : > { %s587_s29 = sshll.u32 %s945_s28, 4  ;;  %s588_s29 = int_to_ptr.vmem [resolvable:$true] %s587_s29 }
 0x425   : > { %s877_s30 = scalar_lea.vmem %s588_s29, 256  ;;  %s883_s5 = scalar_lea.vmem %s588_s29, 512 }
 0x426   : > { %p878_p10 = scmp.ne.s32.totalorder %s588_s29, %s877_s30  ;;  %p884_p13 = scmp.lt.s32.totalorder %s588_s29, %s588_s29 }
 0x427   : > { %p885_p0 = scmp.lt.s32.totalorder %s883_s5, %s877_s30 }
 0x428   : > { %p879_p11 = pnand %p878_p10, %p1118_p8 }
 0x429   : > { %p886_p1 = por %p885_p0, %p884_p13 }
 0x42a   : > { %p880_p12 = pneg %p879_p11 }
 0x42c   : > { %p887_p2 = pnand %p886_p1, %p880_p12 }
 0x42e   : > { %890 = shalt.err (!%p887_p2)
}
 0x42f   : > { %s891_s7 = scalar_lea.hbm %s1155_s3, 256 }
 0x430   : > { %p892_p5 = scmp.ne.s32.totalorder %s1155_s3, %s891_s7  ;;  %p897_p3 = scmp.lt.u32.totalorder %s891_s7, %s1155_s3 }
 0x432   : > { %p893_p7 = pnand %p892_p5, %p1118_p8 }
 0x434   : > { %p894_p9 = pneg %p893_p7 }
 0x436   : > { %p899_p4 = pnand %p897_p3, %p894_p9 }
 0x438   : > { %902 = shalt.err (!%p899_p4)
}
 0x439   : > { %s946_s12 = smov 128   ;;  %s947_s13 = smov 8  }
 0x43a   : > { %770 = dma.vmem_to_hbm [thread:$0]  (%p1118_p8), %s588_s29, 256, %s1155_s3, [#allocation8], %s946_s12, %s946_s12, %s947_s13  }
 0x43b PF: > { %p784_p6 = scmp.ge.s32.totalorder %s933_s17, 2  ;;  %p785_p10 = scmp.eq.s32.totalorder %s721_s19, 1 }
 0x43d   : > { %p778_p11 = pnand %p785_p10, %p784_p6 }
 0x43f   : > { %920 = dma.done.wait (!%p778_p11), [#allocation8], 256  }
 0x440   : > { %922 = vsyncadd (!%p778_p11), [#allocation8], 4294967040  ;;  %s19_s17 = sadd.s32 1, %s933_s17   ;;  %s1166_s15 = smov %s929_s16 }
 0x441   : > { %p16_p12 = scmp.ge.s32.totalorder %s19_s17, 4   ;;  %s1167_s16 = smov %s1169_s20 }
 0x443   :  { %18 = sbr.rel (!%p16_p12) target bundleno = 4 (0x4), region = 104 }
 0x44a   :  { %620 = vsyncpa [#allocation7], 1 }
 0x44b   :  { %622 = vsyncpa [#allocation7 + $0x1], 1 }
 0x44c   :  { %623 = vsyncpa [#allocation8], 1 }
 0x44d   :  { %625 = vsyncpa [#allocation8 + $0x1], 1 }

</bundles_post_ra>
